<compile_context>
chip_gen: v7x
topology: tpu7x:2x2x1
jax: 0.10.0
libtpu: 0.0.40
codegen_flags: <defaults>
</compile_context>

<pallas_src>
import functools

import jax
import jax.numpy as jnp
from jax.experimental import pallas as pl
from jax.experimental.pallas import tpu as pltpu


def _round_up(x, m):
    return (x + m - 1) // m * m


def _mlp_kernel(x_img_ref, x_txt_ref, w1_ref, b1_ref, w2_ref, b2_ref, o_ref,
                *, e, mxu_dtype):
    # Activations stream in as f32; cast to the MXU dtype here (VPU, in VMEM)
    # instead of a separate wrapper-side XLA pass over HBM.
    x_img = x_img_ref[...].astype(mxu_dtype)
    x_txt = x_txt_ref[...].astype(mxu_dtype)

    # fc1 without the HBM concat:
    #   concat([img, txt], -1) @ w1 == img @ w1[:E] + txt @ w1[E:]
    # Static, sublane-aligned ref slices of the resident (2E, H) weight.
    h = jnp.dot(x_img, w1_ref[pl.ds(0, e), :],
                preferred_element_type=jnp.float32)
    h = h + jnp.dot(x_txt, w1_ref[pl.ds(e, e), :],
                    preferred_element_type=jnp.float32)
    h = jnp.maximum(h + b1_ref[...], 0.0)               # bias + ReLU (f32, VPU)

    # fc2 (out_features == 1): one MXU contraction that directly produces the
    # lane-dense [1, TB] row.  No XLU lane reduction, no [TB,1]->[1,TB]
    # relayout copy; the store below writes full 128-lane vregs.
    logits = jax.lax.dot_general(
        w2_ref[...], h.astype(mxu_dtype),
        dimension_numbers=(((1,), (1,)), ((), ())),
        preferred_element_type=jnp.float32)              # [1, TB]
    o_ref[...] = jax.nn.sigmoid(logits + b2_ref[0])


def vector_comparison_forward(image_emb, text_emb, w1, b1, w2, b2,
                              *, tile_b=1024, mxu_dtype=jnp.bfloat16):
    """Pallas implementation of VectorComparisonNet.forward.

    image_emb, text_emb: [B, E] or [E] float32
    w1: [2E, H], b1: [H], w2: [H, 1], b2: [1]
    Returns: [B, 1] float32 in (0, 1)

    mxu_dtype=jnp.float32 gives exact f32 parity with the PyTorch module;
    bf16 (default) is faster on the MXU (esp. v5e) at reduced precision.
    """
    if image_emb.ndim == 1:
        image_emb = image_emb[None, :]
    if text_emb.ndim == 1:
        text_emb = text_emb[None, :]

    B, E = image_emb.shape
    two_e, H = w1.shape
    assert two_e == 2 * E and text_emb.shape == (B, E)

    mxu_dtype = jnp.dtype(mxu_dtype)
    w_bytes = mxu_dtype.itemsize
    act_bytes = jnp.dtype(image_emb.dtype).itemsize

    # Weights: cast at most once per call, never sliced (no per-call
    # w1[:E]/w1[E:] HBM copies).  In a serving path, pre-cast params to
    # mxu_dtype so these are no-ops.
    w1_k = w1 if w1.dtype == mxu_dtype else w1.astype(mxu_dtype)
    w2_k = w2.reshape(1, H)
    w2_k = w2_k if w2_k.dtype == mxu_dtype else w2_k.astype(mxu_dtype)
    b1_row = b1.reshape(1, H).astype(jnp.float32)
    b2_s = b2.reshape(1).astype(jnp.float32)             # SMEM scalar

    # ---- Batch tile selection -------------------------------------------
    # Per-grid-step overhead is ~0.35us and DMA efficiency climbs with block
    # size, so take the largest 128-multiple tile that fits a conservative
    # VMEM budget (safe on v7x's 64 MiB/core and under v5e's scoped default
    # once vmem_limit_bytes is raised below).
    budget = 36 << 20
    resident = 2 * E * H * w_bytes + H * (4 + w_bytes) + 128

    def working_set(t):
        return (2 * 2 * t * E * act_bytes     # double-buffered image+text tiles
                + t * H * 4                    # f32 hidden activations
                + 2 * t * 4                    # output row blocks
                + resident)

    if B < 128:
        # Single full-extent block (block shape == array dims): no padding,
        # no partial blocks, trivially legal layout for tiny batches.
        tb = B
    else:
        cap = _round_up(B, 128)
        tb = min(_round_up(max(tile_b, 128), 128), cap)
        while tb > 128 and working_set(tb) > budget:
            tb -= 128
        # Keep >= 2 grid steps when the batch spans more than one 128-row tile
        # so the "parallel" axis can shard over v7x's two TensorCores.
        if B > 128 and pl.cdiv(B, tb) == 1:
            tb = max(128, _round_up(pl.cdiv(B, 2), 128))
    num_tiles = pl.cdiv(B, tb)
    b_out = num_tiles * tb                               # output stays full-block

    vmem_limit = int(min(48 << 20, max(24 << 20, 2 * working_set(tb))))

    kernel = functools.partial(_mlp_kernel, e=E, mxu_dtype=mxu_dtype)

    def run(resident_kwargs):
        in_specs = [
            pl.BlockSpec((tb, E), lambda i: (i, 0)),      # image tile (f32 in HBM)
            pl.BlockSpec((tb, E), lambda i: (i, 0)),      # text tile  (f32 in HBM)
            pl.BlockSpec((2 * E, H), lambda i: (0, 0), **resident_kwargs),  # w1
            pl.BlockSpec((1, H), lambda i: (0, 0), **resident_kwargs),      # b1 row
            pl.BlockSpec((1, H), lambda i: (0, 0), **resident_kwargs),      # w2 row
            pl.BlockSpec(memory_space=pltpu.MemorySpace.SMEM),               # b2
        ]
        return pl.pallas_call(
            kernel,
            out_shape=jax.ShapeDtypeStruct((1, b_out), jnp.float32),
            grid_spec=pltpu.PrefetchScalarGridSpec(
                num_scalar_prefetch=0,
                grid=(num_tiles,),
                in_specs=in_specs,
                out_specs=pl.BlockSpec((1, tb), lambda i: (0, i)),  # lane-dense
            ),
            compiler_params=pltpu.CompilerParams(
                dimension_semantics=("parallel",),        # megacore on v7x
                vmem_limit_bytes=vmem_limit),
        )(image_emb, text_emb, w1_k, b1_row, w2_k, b2_s)

    try:
        # Constant-index resident blocks need only a single VMEM buffer.
        out_row = run({"pipeline_mode": pl.Buffered(1)})
    except Exception:
        # Fallback if this runtime rejects single-buffered block specs.
        out_row = run({})

    # Ragged-last-block garbage only ever lands in lanes >= B; slice it off.
    return out_row[0, :B, None]                           # [B, 1]


def init_params(key, embedding_dim, hidden_dim):
    """Deterministic init mirroring nn.Linear default (uniform(-1/sqrt(fan_in), +))."""
    k1, k2, k3, k4 = jax.random.split(key, 4)
    fan1 = embedding_dim * 2
    lim1 = 1.0 / jnp.sqrt(fan1)
    w1 = jax.random.uniform(k1, (fan1, hidden_dim), jnp.float32, -lim1, lim1)
    b1 = jax.random.uniform(k2, (hidden_dim,), jnp.float32, -lim1, lim1)
    lim2 = 1.0 / jnp.sqrt(hidden_dim)
    w2 = jax.random.uniform(k3, (hidden_dim, 1), jnp.float32, -lim2, lim2)
    b2 = jax.random.uniform(k4, (1,), jnp.float32, -lim2, lim2)
    return w1, b1, w2, b2


def _reference(image_emb, text_emb, w1, b1, w2, b2):
    if image_emb.ndim == 1:
        image_emb = image_emb[None, :]
    if text_emb.ndim == 1:
        text_emb = text_emb[None, :]
    combined = jnp.concatenate([image_emb, text_emb], axis=-1)
    return jax.nn.sigmoid(jnp.maximum(combined @ w1 + b1, 0.0) @ w2 + b2)


if __name__ == "__main__":
    # --- Case 1: tiny module-spec shapes, exact f32 MXU path -----------------
    embedding_dim, hidden_dim, batch = 16, 32, 2
    kp, ki, kt = jax.random.split(jax.random.PRNGKey(0), 3)
    w1, b1, w2, b2 = init_params(kp, embedding_dim, hidden_dim)
    image_emb = jax.random.normal(ki, (batch, embedding_dim), jnp.float32)
    text_emb = jax.random.normal(kt, (batch, embedding_dim), jnp.float32)

    out = vector_comparison_forward(image_emb, text_emb, w1, b1, w2, b2,
                                    mxu_dtype=jnp.float32)
    out = jax.block_until_ready(out)
    ref = _reference(image_emb, text_emb, w1, b1, w2, b2)
    assert out.shape == (batch, 1)
    assert jnp.allclose(out, ref, atol=1e-5), (out, ref)

    # 1-D (single pair) path, mirroring the module's unsqueeze behavior.
    out1 = vector_comparison_forward(image_emb[0], text_emb[0], w1, b1, w2, b2,
                                     mxu_dtype=jnp.float32)
    out1 = jax.block_until_ready(out1)
    assert out1.shape == (1, 1)
    assert jnp.allclose(out1, ref[0:1], atol=1e-5), (out1, ref[0:1])

    # --- Case 2: multi-tile grid, ragged last block, bf16 MXU operands -------
    embedding_dim, hidden_dim, batch = 64, 128, 300
    kp, ki, kt = jax.random.split(jax.random.PRNGKey(0), 3)
    w1, b1, w2, b2 = init_params(kp, embedding_dim, hidden_dim)
    image_emb = jax.random.normal(ki, (batch, embedding_dim), jnp.float32)
    text_emb = jax.random.normal(kt, (batch, embedding_dim), jnp.float32)

    out2 = vector_comparison_forward(image_emb, text_emb, w1, b1, w2, b2,
                                     tile_b=128, mxu_dtype=jnp.bfloat16)
    out2 = jax.block_until_ready(out2)
    ref2 = _reference(image_emb, text_emb, w1, b1, w2, b2)
    assert out2.shape == (batch, 1)
    assert jnp.allclose(out2, ref2, atol=2e-2), (out2, ref2)

    print("KERNEL_OK")
</pallas_src>

<mosaic_0001>
module attributes {stable_mosaic.version = 11 : i64} {
  func.func @_mlp_kernel(%arg0: i32, %arg1: memref<2x16xf32, #tpu.memory_space<vmem>>, %arg2: memref<2x16xf32, #tpu.memory_space<vmem>>, %arg3: memref<32x32xf32, #tpu.memory_space<vmem>>, %arg4: memref<1x32xf32, #tpu.memory_space<vmem>>, %arg5: memref<1x32xf32, #tpu.memory_space<vmem>>, %arg6: memref<1xf32, #tpu.memory_space<smem>>, %arg7: memref<1x2xf32, #tpu.memory_space<vmem>>) attributes {dimension_semantics = [#tpu.dimension_semantics<parallel>], iteration_bounds = array<i64: 1>, scalar_prefetch = 0 : i64, scratch_operands = 0 : i64, tpu.core_type = #tpu.core_type<tc>, window_params = [{transform_indices = @transform_0, window_bounds = array<i64: 2, 16>}, {transform_indices = @transform_1, window_bounds = array<i64: 2, 16>}, {pipeline_mode = #tpu.pipeline_mode<synchronous>, transform_indices = @transform_2, window_bounds = array<i64: 32, 32>}, {pipeline_mode = #tpu.pipeline_mode<synchronous>, transform_indices = @transform_3, window_bounds = array<i64: 1, 32>}, {pipeline_mode = #tpu.pipeline_mode<synchronous>, transform_indices = @transform_4, window_bounds = array<i64: 1, 32>}, {transform_indices = @transform_5, window_bounds = array<i64: 1>}, {transform_indices = @transform_6, window_bounds = array<i64: 1, 2>}]} {
    %c0 = arith.constant 0 : index
    %c0_0 = arith.constant 0 : index
    %0 = vector.load %arg1[%c0, %c0_0] : memref<2x16xf32, #tpu.memory_space<vmem>>, vector<2x16xf32>
    %c0_1 = arith.constant 0 : index
    %c0_2 = arith.constant 0 : index
    %1 = vector.load %arg2[%c0_1, %c0_2] : memref<2x16xf32, #tpu.memory_space<vmem>>, vector<2x16xf32>
    %c0_3 = arith.constant 0 : index
    %c0_4 = arith.constant 0 : index
    %2 = vector.load %arg3[%c0_3, %c0_4] : memref<32x32xf32, #tpu.memory_space<vmem>>, vector<16x32xf32>
    %cst = arith.constant dense<0.000000e+00> : vector<2x32xf32>
    %3 = tpu.matmul %0, %2, %cst {dimension_numbers = #tpu.dot_dimension_numbers<[1], [0], [0], [1], [0, 0, 1, 1], [], []>} : vector<2x16xf32>, vector<16x32xf32>, vector<2x32xf32> -> vector<2x32xf32>
    %c16 = arith.constant 16 : index
    %c0_5 = arith.constant 0 : index
    %4 = vector.load %arg3[%c16, %c0_5] : memref<32x32xf32, #tpu.memory_space<vmem>>, vector<16x32xf32>
    %cst_6 = arith.constant dense<0.000000e+00> : vector<2x32xf32>
    %5 = tpu.matmul %1, %4, %cst_6 {dimension_numbers = #tpu.dot_dimension_numbers<[1], [0], [0], [1], [0, 0, 1, 1], [], []>} : vector<2x16xf32>, vector<16x32xf32>, vector<2x32xf32> -> vector<2x32xf32>
    %6 = arith.addf %3, %5 : vector<2x32xf32>
    %c0_7 = arith.constant 0 : index
    %c0_8 = arith.constant 0 : index
    %7 = vector.load %arg4[%c0_7, %c0_8] : memref<1x32xf32, #tpu.memory_space<vmem>>, vector<1x32xf32>
    %8 = vector.broadcast %7 : vector<1x32xf32> to vector<2x32xf32>
    %9 = arith.addf %6, %8 : vector<2x32xf32>
    %cst_9 = arith.constant 0.000000e+00 : f32
    %10 = vector.broadcast %cst_9 : f32 to vector<2x32xf32>
    %11 = arith.maximumf %9, %10 : vector<2x32xf32>
    %c0_10 = arith.constant 0 : index
    %c0_11 = arith.constant 0 : index
    %12 = vector.load %arg5[%c0_10, %c0_11] : memref<1x32xf32, #tpu.memory_space<vmem>>, vector<1x32xf32>
    %cst_12 = arith.constant dense<0.000000e+00> : vector<1x2xf32>
    %13 = tpu.matmul %12, %11, %cst_12 {dimension_numbers = #tpu.dot_dimension_numbers<[1], [1], [0], [0], [0, 0, 1, 0], [], []>} : vector<1x32xf32>, vector<2x32xf32>, vector<1x2xf32> -> vector<1x2xf32>
    %c0_13 = arith.constant 0 : index
    %14 = memref.load %arg6[%c0_13] : memref<1xf32, #tpu.memory_space<smem>>
    %15 = vector.broadcast %14 : f32 to vector<1x2xf32>
    %16 = arith.addf %13, %15 : vector<1x2xf32>
    %17 = arith.negf %16 : vector<1x2xf32>
    %18 = math.exp %17 : vector<1x2xf32>
    %cst_14 = arith.constant 1.000000e+00 : f32
    %19 = vector.broadcast %cst_14 : f32 to vector<1x2xf32>
    %20 = arith.addf %19, %18 : vector<1x2xf32>
    %21 = arith.divf %19, %20 : vector<1x2xf32>
    %c0_15 = arith.constant 0 : index
    %c0_16 = arith.constant 0 : index
    %22 = vector.load %arg7[%c0_15, %c0_16] : memref<1x2xf32, #tpu.memory_space<vmem>>, vector<1x2xf32>
    tpu.vector_store %arg7[%c0_15, %c0_16], %21 {strides = array<i32>} : memref<1x2xf32, #tpu.memory_space<vmem>>, vector<1x2xf32>,
    return
  }
  func.func @transform_0(%arg0: i32) -> (i32, i32) {
    %c0_i32 = arith.constant 0 : i32
    %c0_i32_0 = arith.constant 0 : i32
    return %arg0, %c0_i32 : i32, i32
  }
  func.func @transform_1(%arg0: i32) -> (i32, i32) {
    %c0_i32 = arith.constant 0 : i32
    %c0_i32_0 = arith.constant 0 : i32
    return %arg0, %c0_i32 : i32, i32
  }
  func.func @transform_2(%arg0: i32) -> (i32, i32) {
    %c0_i32 = arith.constant 0 : i32
    %c0_i32_0 = arith.constant 0 : i32
    %c0_i32_1 = arith.constant 0 : i32
    return %c0_i32, %c0_i32_0 : i32, i32
  }
  func.func @transform_3(%arg0: i32) -> (i32, i32) {
    %c0_i32 = arith.constant 0 : i32
    %c0_i32_0 = arith.constant 0 : i32
    %c0_i32_1 = arith.constant 0 : i32
    return %c0_i32, %c0_i32_0 : i32, i32
  }
  func.func @transform_4(%arg0: i32) -> (i32, i32) {
    %c0_i32 = arith.constant 0 : i32
    %c0_i32_0 = arith.constant 0 : i32
    %c0_i32_1 = arith.constant 0 : i32
    return %c0_i32, %c0_i32_0 : i32, i32
  }
  func.func @transform_5(%arg0: i32) -> i32 {
    %c0_i32 = arith.constant 0 : i32
    %c0_i32_0 = arith.constant 0 : i32
    return %c0_i32 : i32
  }
  func.func @transform_6(%arg0: i32) -> (i32, i32) {
    %c0_i32 = arith.constant 0 : i32
    %c0_i32_0 = arith.constant 0 : i32
    return %c0_i32, %arg0 : i32, i32
  }
}

module attributes {stable_mosaic.version = 11 : i64} {
  func.func @_mlp_kernel(%arg0: i32, %arg1: memref<2x16xf32, #tpu.memory_space<vmem>>, %arg2: memref<2x16xf32, #tpu.memory_space<vmem>>, %arg3: memref<32x32xf32, #tpu.memory_space<vmem>>, %arg4: memref<1x32xf32, #tpu.memory_space<vmem>>, %arg5: memref<1x32xf32, #tpu.memory_space<vmem>>, %arg6: memref<1xf32, #tpu.memory_space<smem>>, %arg7: memref<1x2xf32, #tpu.memory_space<vmem>>) attributes {dimension_semantics = [#tpu.dimension_semantics<parallel>], iteration_bounds = array<i64: 1>, scalar_prefetch = 0 : i64, scratch_operands = 0 : i64, tpu.core_type = #tpu.core_type<tc>, window_params = [{transform_indices = @transform_0, window_bounds = array<i64: 2, 16>}, {transform_indices = @transform_1, window_bounds = array<i64: 2, 16>}, {pipeline_mode = #tpu.pipeline_mode<synchronous>, transform_indices = @transform_2, window_bounds = array<i64: 32, 32>}, {pipeline_mode = #tpu.pipeline_mode<synchronous>, transform_indices = @transform_3, window_bounds = array<i64: 1, 32>}, {pipeline_mode = #tpu.pipeline_mode<synchronous>, transform_indices = @transform_4, window_bounds = array<i64: 1, 32>}, {transform_indices = @transform_5, window_bounds = array<i64: 1>}, {transform_indices = @transform_6, window_bounds = array<i64: 1, 2>}]} {
    %c0 = arith.constant 0 : index
    %c0_0 = arith.constant 0 : index
    %0 = vector.load %arg1[%c0, %c0_0] : memref<2x16xf32, #tpu.memory_space<vmem>>, vector<2x16xf32>
    %c0_1 = arith.constant 0 : index
    %c0_2 = arith.constant 0 : index
    %1 = vector.load %arg2[%c0_1, %c0_2] : memref<2x16xf32, #tpu.memory_space<vmem>>, vector<2x16xf32>
    %c0_3 = arith.constant 0 : index
    %c0_4 = arith.constant 0 : index
    %2 = vector.load %arg3[%c0_3, %c0_4] : memref<32x32xf32, #tpu.memory_space<vmem>>, vector<16x32xf32>
    %cst = arith.constant dense<0.000000e+00> : vector<2x32xf32>
    %3 = tpu.matmul %0, %2, %cst {dimension_numbers = #tpu.dot_dimension_numbers<[1], [0], [0], [1], [0, 0, 1, 1], [], []>} : vector<2x16xf32>, vector<16x32xf32>, vector<2x32xf32> -> vector<2x32xf32>
    %c16 = arith.constant 16 : index
    %c0_5 = arith.constant 0 : index
    %4 = vector.load %arg3[%c16, %c0_5] : memref<32x32xf32, #tpu.memory_space<vmem>>, vector<16x32xf32>
    %cst_6 = arith.constant dense<0.000000e+00> : vector<2x32xf32>
    %5 = tpu.matmul %1, %4, %cst_6 {dimension_numbers = #tpu.dot_dimension_numbers<[1], [0], [0], [1], [0, 0, 1, 1], [], []>} : vector<2x16xf32>, vector<16x32xf32>, vector<2x32xf32> -> vector<2x32xf32>
    %6 = arith.addf %3, %5 : vector<2x32xf32>
    %c0_7 = arith.constant 0 : index
    %c0_8 = arith.constant 0 : index
    %7 = vector.load %arg4[%c0_7, %c0_8] : memref<1x32xf32, #tpu.memory_space<vmem>>, vector<1x32xf32>
    %8 = vector.broadcast %7 : vector<1x32xf32> to vector<2x32xf32>
    %9 = arith.addf %6, %8 : vector<2x32xf32>
    %cst_9 = arith.constant 0.000000e+00 : f32
    %10 = vector.broadcast %cst_9 : f32 to vector<2x32xf32>
    %11 = arith.maximumf %9, %10 : vector<2x32xf32>
    %c0_10 = arith.constant 0 : index
    %c0_11 = arith.constant 0 : index
    %12 = vector.load %arg5[%c0_10, %c0_11] : memref<1x32xf32, #tpu.memory_space<vmem>>, vector<1x32xf32>
    %cst_12 = arith.constant dense<0.000000e+00> : vector<1x2xf32>
    %13 = tpu.matmul %12, %11, %cst_12 {dimension_numbers = #tpu.dot_dimension_numbers<[1], [1], [0], [0], [0, 0, 1, 0], [], []>} : vector<1x32xf32>, vector<2x32xf32>, vector<1x2xf32> -> vector<1x2xf32>
    %c0_13 = arith.constant 0 : index
    %14 = memref.load %arg6[%c0_13] : memref<1xf32, #tpu.memory_space<smem>>
    %15 = vector.broadcast %14 : f32 to vector<1x2xf32>
    %16 = arith.addf %13, %15 : vector<1x2xf32>
    %17 = arith.negf %16 : vector<1x2xf32>
    %18 = math.exp %17 : vector<1x2xf32>
    %cst_14 = arith.constant 1.000000e+00 : f32
    %19 = vector.broadcast %cst_14 : f32 to vector<1x2xf32>
    %20 = arith.addf %19, %18 : vector<1x2xf32>
    %21 = arith.divf %19, %20 : vector<1x2xf32>
    %c0_15 = arith.constant 0 : index
    %c0_16 = arith.constant 0 : index
    %22 = vector.load %arg7[%c0_15, %c0_16] : memref<1x2xf32, #tpu.memory_space<vmem>>, vector<1x2xf32>
    tpu.vector_store %arg7[%c0_15, %c0_16], %21 {strides = array<i32>} : memref<1x2xf32, #tpu.memory_space<vmem>>, vector<1x2xf32>,
    return
  }
  func.func @transform_0(%arg0: i32) -> (i32, i32) {
    %c0_i32 = arith.constant 0 : i32
    %c0_i32_0 = arith.constant 0 : i32
    return %arg0, %c0_i32 : i32, i32
  }
  func.func @transform_1(%arg0: i32) -> (i32, i32) {
    %c0_i32 = arith.constant 0 : i32
    %c0_i32_0 = arith.constant 0 : i32
    return %arg0, %c0_i32 : i32, i32
  }
  func.func @transform_2(%arg0: i32) -> (i32, i32) {
    %c0_i32 = arith.constant 0 : i32
    %c0_i32_0 = arith.constant 0 : i32
    %c0_i32_1 = arith.constant 0 : i32
    return %c0_i32, %c0_i32_0 : i32, i32
  }
  func.func @transform_3(%arg0: i32) -> (i32, i32) {
    %c0_i32 = arith.constant 0 : i32
    %c0_i32_0 = arith.constant 0 : i32
    %c0_i32_1 = arith.constant 0 : i32
    return %c0_i32, %c0_i32_0 : i32, i32
  }
  func.func @transform_4(%arg0: i32) -> (i32, i32) {
    %c0_i32 = arith.constant 0 : i32
    %c0_i32_0 = arith.constant 0 : i32
    %c0_i32_1 = arith.constant 0 : i32
    return %c0_i32, %c0_i32_0 : i32, i32
  }
  func.func @transform_5(%arg0: i32) -> i32 {
    %c0_i32 = arith.constant 0 : i32
    %c0_i32_0 = arith.constant 0 : i32
    return %c0_i32 : i32
  }
  func.func @transform_6(%arg0: i32) -> (i32, i32) {
    %c0_i32 = arith.constant 0 : i32
    %c0_i32_0 = arith.constant 0 : i32
    return %c0_i32, %arg0 : i32, i32
  }
}

</mosaic_0001>

<bundles_post_ra>
// kernel: tpu_custom_call.1
= control target key start
LH: loop header
LB: loop body
LE: loop exit
PB: predicated region body
PF: predicated region fallthrough
CT: control target
= control target key end

     0   :  { %12 = vsyncpa [#allocation4], 0  ;;  %s486_s0 = inlined_call_operand.vmem [shape: f32[2,16], index: 0, kind: input, shape index: {}]   ;;  %s487_s1 = inlined_call_operand.vmem [shape: f32[2,16], index: 1, kind: input, shape index: {}]   ;;  %s488_s2 = inlined_call_operand.hbm [shape: f32[32,32], index: 2, kind: input, shape index: {}]   ;;  %s489_s3 = inlined_call_operand.vmem [shape: f32[1,32], index: 3, kind: input, shape index: {}]   ;;  %s490_s4 = inlined_call_operand.vmem [shape: f32[1,32], index: 4, kind: input, shape index: {}]   ;;  %s491_s5 = inlined_call_operand.<no memory space> [shape: f32[1], index: 5, kind: input, shape index: {}]   ;;  %s492_s6 = inlined_call_operand.hbm [shape: f32[1,2], index: 6, kind: output, shape index: {}]  }
   0x1   :  { %13 = vsyncpa [#allocation5], 0  ;;  %s402_s21 = smov [#allocation3]   ;;  %s354_s25 = scalar_lea.hbm %s488_s2, 512 }
   0x2   :  { %s23_s22 = sshll.u32 %s402_s21, 4  ;;  %p355_p0 = scmp.ne.s32.totalorder %s488_s2, %s354_s25  ;;  %s24_s22 = int_to_ptr.vmem [resolvable:$true] %s23_s22 }
   0x3   :  { %p358_p1 = scmp.lt.u32.totalorder %s354_s25, %s488_s2 }
   0x5   :  { %p360_p2 = pnand %p358_p1, %p355_p0 }
   0x7   :  { %363 = shalt.err (!%p360_p2)
}
   0x8   :  { %s364_s30 = scalar_lea.vmem %s24_s22, 512  ;;  %p369_p4 = scmp.lt.s32.totalorder %s24_s22, %s24_s22 }
   0x9   :  { %p365_p3 = scmp.ne.s32.totalorder %s24_s22, %s364_s30  ;;  %p370_p5 = scmp.lt.s32.totalorder %s364_s30, %s364_s30 }
   0xb   :  { %p371_p6 = por %p370_p5, %p369_p4 }
   0xd   :  { %p372_p7 = pnand %p371_p6, %p365_p3 }
   0xf   :  { %375 = shalt.err (!%p372_p7)
}
  0x10   :  { %s403_s7 = smov 128   ;;  %s404_s8 = smov 8  }
  0x11   :  { %29 = dma.hbm_to_vmem [thread:$0]  %s488_s2, 512, %s24_s22, [#allocation4], %s403_s7, %s403_s7, %s404_s8  }
  0x12   :  { %398 = dma.done.wait [#allocation4], 512  }
  0x13   :  { %399 = vsyncadd [#allocation4], 4294966784  ;;  %v405_v0 = vmov 0.0|0.0   ;;  %vm406_vm0 = vmmov 0   ;;  %v407_v1 = vmov 0.0   ;;  %v43_v2 = vld [vmem:[#allocation3 + $0x10] sm:$0xff]  ;;  %v203_v19 = vstv %s491_s5 }
  0x14   :  { %337 = vmatprep.subr.bf16.mxu0 %v405_v0  ;;  %340 = vmatprep.subr.bf16.mxu1 %v405_v0  ;;  %v44_v3 = vld [vmem:[#allocation3 + $0x18] sm:$0xff]  ;;  %v41_v4 = vld [vmem:[#allocation3] sm:$0xff]  ;;  %v42_v6 = vld [vmem:[#allocation3 + $0x8] sm:$0xff]  ;;  %vm45_vm1 = vcmask 130048   ;;  %vm204_vm2 = vcmask 261120   ;;  %vm287_vm3 = vcmask 8192  }
  0x15   :  { %322 = vmatprep.mubr.msk.f32.mxu0 %vm406_vm0, %v407_v1  ;;  %329 = vmatprep.mubr.msk.f32.mxu1 %vm406_vm0, %v407_v1  ;;  %v338_v5 = vpack.c.bf16 %v44_v3, %v43_v2  ;;  %v341_v7 = vpack.c.bf16 %v42_v6, %v41_v4  ;;  %v40_v8 = vld [vmem:[%s487_s1] sm:$0x3] }
  0x16   :  { %v39_v9 = vld [vmem:[%s486_s0] sm:$0x3] }
  0x17   :  { %339 = vmatpush3.bf16.msra.mxu0 %v338_v5  ;;  %342 = vmatpush3.bf16.msra.mxu1 %v341_v7  ;;  %v306_v12 = vld [vmem:[%s489_s3] ss:$0 sm:$0xff]  ;;  %s408_s3 = smov [#allocation6]  }
  0x18   :  { %332 = vmatprep.subr.mxu0 %v407_v1  ;;  %v201_v18 = vld [vmem:[%s490_s4] sm:$0x1]  ;;  %s295_s18 = sshll.u32 %s408_s3, 4  ;;  %s296_s18 = int_to_ptr.vmem [resolvable:$true] %s295_s18 }
  0x19   :  { %s376_s4 = scalar_lea.vmem %s296_s18, 16  ;;  %s380_s19 = scalar_lea.vmem %s296_s18, 32 }
  0x1a   :  { %323 = vmatmul.mubr.msk.f32.vlgmr.msra.gmra.mrb[0].mxu0 %vm45_vm1, %v40_v8  ;;  %330 = vmatmul.mubr.msk.f32.vlgmr.msra.gmra.mrb[0].mxu1 %vm45_vm1, %v39_v9  ;;  %p377_p8 = scmp.ne.s32.totalorder %s296_s18, %s376_s4  ;;  %p381_p9 = scmp.lt.s32.totalorder %s296_s18, %s296_s18 }
  0x1b   :  { %334 = vmatprep.mubr.msk.f32.mxu0 %vm406_vm0, %v407_v1  ;;  %p382_p10 = scmp.lt.s32.totalorder %s380_s19, %s376_s4 }
  0x1d   :  { %p383_p11 = por %p382_p10, %p381_p9 }
  0x1f   :  { %p384_p12 = pnand %p383_p11, %p377_p8 }
  0xed   :  { %v115_v10 = vpop.f32.mrb[0].mxu0  ;;  %v188_v11 = vpop.f32.mrb[0].mxu1 }
  0xee   :  { %v324_v13 = vpop.f32.mrb[1].mxu0  ;;  %v189_v14 = vadd.f32 %v188_v11, %v115_v10  ;;  %v331_v15 = vpop.f32.mrb[1].mxu1 }
  0xf0   :  { %v199_v16 = vadd.f32 %v306_v12, %v189_v14 }
  0xf2   :  { %v200_v17 = vmax.f32 %v199_v16, 0.0 }
  0xf4   :  { %333 = vmatpush3.xpose.msk.msra.mxu0 %vm204_vm2, %v200_v17 }
  0xf7   :  { %335 = vmatmul.mubr.msk.f32.vlgmr.msra.gmra.mrb[2].mxu0 %vm204_vm2, %v201_v18 }
 0x1ca   :  { %v277_v20 = vpop.f32.mrb[2].mxu0 }
 0x1cb   :  { %v278_v21 = vadd.f32 %v277_v20, %v203_v19  ;;  %v336_v22 = vpop.f32.mrb[3].mxu0 }
 0x1cd   :  { %v309_v23 = vmul.f32 -1.442695, %v278_v21 }
 0x1cf   :  { %350 = vpow2.f32 %v309_v23 }
 0x1d9   :  { %v351_v24 = vpop.eup %350 }
 0x1da   :  { %v284_v25 = vadd.f32 1.0, %v351_v24 }
 0x1dc   :  { %352 = vrcp.f32 %v284_v25 }
 0x1e6   :  { %v353_v26 = vpop.eup %352 }
 0x1e7   :  { %288 = vst.msk [vmem:[#allocation6] sm:$0x1] %vm287_vm3, %v353_v26 }
 0x1e8   :  { %387 = shalt.err (!%p384_p12)
}
 0x1e9   :  { %s388_s21 = scalar_lea.hbm %s492_s6, 16 }
 0x1ea   :  { %p389_p13 = scmp.ne.s32.totalorder %s492_s6, %s388_s21  ;;  %p392_p0 = scmp.lt.u32.totalorder %s388_s21, %s492_s6 }
 0x1ec   :  { %p394_p1 = pnand %p392_p0, %p389_p13 }
 0x1ee   :  { %397 = shalt.err (!%p394_p1)
}
 0x1ef   :  { %298 = dma.vmem_to_hbm [thread:$0]  %s296_s18, 16, %s492_s6, [#allocation5]  }
 0x1f0   :  { %400 = dma.done.wait [#allocation5], 16  }
 0x1f1   :  { %401 = vsyncadd [#allocation5], 4294967280 }
 0x1f2   :  { %302 = vsyncpa [#allocation4], 1 }
 0x1f3   :  { %303 = vsyncpa [#allocation5], 1 }

// kernel: tpu_custom_call.1
= control target key start
LH: loop header
LB: loop body
LE: loop exit
PB: predicated region body
PF: predicated region fallthrough
CT: control target
= control target key end

     0   :  { %12 = vsyncpa [#allocation4], 0  ;;  %s486_s0 = inlined_call_operand.vmem [shape: f32[2,16], index: 0, kind: input, shape index: {}]   ;;  %s487_s1 = inlined_call_operand.vmem [shape: f32[2,16], index: 1, kind: input, shape index: {}]   ;;  %s488_s2 = inlined_call_operand.hbm [shape: f32[32,32], index: 2, kind: input, shape index: {}]   ;;  %s489_s3 = inlined_call_operand.vmem [shape: f32[1,32], index: 3, kind: input, shape index: {}]   ;;  %s490_s4 = inlined_call_operand.vmem [shape: f32[1,32], index: 4, kind: input, shape index: {}]   ;;  %s491_s5 = inlined_call_operand.<no memory space> [shape: f32[1], index: 5, kind: input, shape index: {}]   ;;  %s492_s6 = inlined_call_operand.hbm [shape: f32[1,2], index: 6, kind: output, shape index: {}]  }
   0x1   :  { %13 = vsyncpa [#allocation5], 0  ;;  %s402_s21 = smov [#allocation3]   ;;  %s354_s25 = scalar_lea.hbm %s488_s2, 512 }
   0x2   :  { %s23_s22 = sshll.u32 %s402_s21, 4  ;;  %p355_p0 = scmp.ne.s32.totalorder %s488_s2, %s354_s25  ;;  %s24_s22 = int_to_ptr.vmem [resolvable:$true] %s23_s22 }
   0x3   :  { %p358_p1 = scmp.lt.u32.totalorder %s354_s25, %s488_s2 }
   0x5   :  { %p360_p2 = pnand %p358_p1, %p355_p0 }
   0x7   :  { %363 = shalt.err (!%p360_p2)
}
   0x8   :  { %s364_s30 = scalar_lea.vmem %s24_s22, 512  ;;  %p369_p4 = scmp.lt.s32.totalorder %s24_s22, %s24_s22 }
   0x9   :  { %p365_p3 = scmp.ne.s32.totalorder %s24_s22, %s364_s30  ;;  %p370_p5 = scmp.lt.s32.totalorder %s364_s30, %s364_s30 }
   0xb   :  { %p371_p6 = por %p370_p5, %p369_p4 }
   0xd   :  { %p372_p7 = pnand %p371_p6, %p365_p3 }
   0xf   :  { %375 = shalt.err (!%p372_p7)
}
  0x10   :  { %s403_s7 = smov 128   ;;  %s404_s8 = smov 8  }
  0x11   :  { %29 = dma.hbm_to_vmem [thread:$0]  %s488_s2, 512, %s24_s22, [#allocation4], %s403_s7, %s403_s7, %s404_s8  }
  0x12   :  { %398 = dma.done.wait [#allocation4], 512  }
  0x13   :  { %399 = vsyncadd [#allocation4], 4294966784  ;;  %v405_v0 = vmov 0.0|0.0   ;;  %vm406_vm0 = vmmov 0   ;;  %v407_v1 = vmov 0.0   ;;  %v43_v2 = vld [vmem:[#allocation3 + $0x10] sm:$0xff]  ;;  %v203_v19 = vstv %s491_s5 }
  0x14   :  { %337 = vmatprep.subr.bf16.mxu0 %v405_v0  ;;  %340 = vmatprep.subr.bf16.mxu1 %v405_v0  ;;  %v44_v3 = vld [vmem:[#allocation3 + $0x18] sm:$0xff]  ;;  %v41_v4 = vld [vmem:[#allocation3] sm:$0xff]  ;;  %v42_v6 = vld [vmem:[#allocation3 + $0x8] sm:$0xff]  ;;  %vm45_vm1 = vcmask 130048   ;;  %vm204_vm2 = vcmask 261120   ;;  %vm287_vm3 = vcmask 8192  }
  0x15   :  { %322 = vmatprep.mubr.msk.f32.mxu0 %vm406_vm0, %v407_v1  ;;  %329 = vmatprep.mubr.msk.f32.mxu1 %vm406_vm0, %v407_v1  ;;  %v338_v5 = vpack.c.bf16 %v44_v3, %v43_v2  ;;  %v341_v7 = vpack.c.bf16 %v42_v6, %v41_v4  ;;  %v40_v8 = vld [vmem:[%s487_s1] sm:$0x3] }
  0x16   :  { %v39_v9 = vld [vmem:[%s486_s0] sm:$0x3] }
  0x17   :  { %339 = vmatpush3.bf16.msra.mxu0 %v338_v5  ;;  %342 = vmatpush3.bf16.msra.mxu1 %v341_v7  ;;  %v306_v12 = vld [vmem:[%s489_s3] ss:$0 sm:$0xff]  ;;  %s408_s3 = smov [#allocation6]  }
  0x18   :  { %332 = vmatprep.subr.mxu0 %v407_v1  ;;  %v201_v18 = vld [vmem:[%s490_s4] sm:$0x1]  ;;  %s295_s18 = sshll.u32 %s408_s3, 4  ;;  %s296_s18 = int_to_ptr.vmem [resolvable:$true] %s295_s18 }
  0x19   :  { %s376_s4 = scalar_lea.vmem %s296_s18, 16  ;;  %s380_s19 = scalar_lea.vmem %s296_s18, 32 }
  0x1a   :  { %323 = vmatmul.mubr.msk.f32.vlgmr.msra.gmra.mrb[0].mxu0 %vm45_vm1, %v40_v8  ;;  %330 = vmatmul.mubr.msk.f32.vlgmr.msra.gmra.mrb[0].mxu1 %vm45_vm1, %v39_v9  ;;  %p377_p8 = scmp.ne.s32.totalorder %s296_s18, %s376_s4  ;;  %p381_p9 = scmp.lt.s32.totalorder %s296_s18, %s296_s18 }
  0x1b   :  { %334 = vmatprep.mubr.msk.f32.mxu0 %vm406_vm0, %v407_v1  ;;  %p382_p10 = scmp.lt.s32.totalorder %s380_s19, %s376_s4 }
  0x1d   :  { %p383_p11 = por %p382_p10, %p381_p9 }
  0x1f   :  { %p384_p12 = pnand %p383_p11, %p377_p8 }
  0xed   :  { %v115_v10 = vpop.f32.mrb[0].mxu0  ;;  %v188_v11 = vpop.f32.mrb[0].mxu1 }
  0xee   :  { %v324_v13 = vpop.f32.mrb[1].mxu0  ;;  %v189_v14 = vadd.f32 %v188_v11, %v115_v10  ;;  %v331_v15 = vpop.f32.mrb[1].mxu1 }
  0xf0   :  { %v199_v16 = vadd.f32 %v306_v12, %v189_v14 }
  0xf2   :  { %v200_v17 = vmax.f32 %v199_v16, 0.0 }
  0xf4   :  { %333 = vmatpush3.xpose.msk.msra.mxu0 %vm204_vm2, %v200_v17 }
  0xf7   :  { %335 = vmatmul.mubr.msk.f32.vlgmr.msra.gmra.mrb[2].mxu0 %vm204_vm2, %v201_v18 }
 0x1ca   :  { %v277_v20 = vpop.f32.mrb[2].mxu0 }
 0x1cb   :  { %v278_v21 = vadd.f32 %v277_v20, %v203_v19  ;;  %v336_v22 = vpop.f32.mrb[3].mxu0 }
 0x1cd   :  { %v309_v23 = vmul.f32 -1.442695, %v278_v21 }
 0x1cf   :  { %350 = vpow2.f32 %v309_v23 }
 0x1d9   :  { %v351_v24 = vpop.eup %350 }
 0x1da   :  { %v284_v25 = vadd.f32 1.0, %v351_v24 }
 0x1dc   :  { %352 = vrcp.f32 %v284_v25 }
 0x1e6   :  { %v353_v26 = vpop.eup %352 }
 0x1e7   :  { %288 = vst.msk [vmem:[#allocation6] sm:$0x1] %vm287_vm3, %v353_v26 }
 0x1e8   :  { %387 = shalt.err (!%p384_p12)
}
 0x1e9   :  { %s388_s21 = scalar_lea.hbm %s492_s6, 16 }
 0x1ea   :  { %p389_p13 = scmp.ne.s32.totalorder %s492_s6, %s388_s21  ;;  %p392_p0 = scmp.lt.u32.totalorder %s388_s21, %s492_s6 }
 0x1ec   :  { %p394_p1 = pnand %p392_p0, %p389_p13 }
 0x1ee   :  { %397 = shalt.err (!%p394_p1)
}
 0x1ef   :  { %298 = dma.vmem_to_hbm [thread:$0]  %s296_s18, 16, %s492_s6, [#allocation5]  }
 0x1f0   :  { %400 = dma.done.wait [#allocation5], 16  }
 0x1f1   :  { %401 = vsyncadd [#allocation5], 4294967280 }
 0x1f2   :  { %302 = vsyncpa [#allocation4], 1 }
 0x1f3   :  { %303 = vsyncpa [#allocation5], 1 }

</bundles_post_ra>
